<compile_context>
chip_gen: v7x
topology: tpu7x:2x2x1
jax: 0.10.0
libtpu: 0.0.40
codegen_flags: <defaults>
</compile_context>

<pallas_src>
import math
from functools import partial

import jax
import jax.numpy as jnp
from jax.experimental import pallas as pl
from jax.experimental.pallas import tpu as pltpu


VMEM_LIMIT = 32 * 1024 * 1024          # safe on v5e / v6e / v7x scoped VMEM


def _pick_tile(dim, target, align):
    """Largest `align`-multiple tile <= target that divides `dim`, else full dim."""
    if dim <= target:
        return dim
    t = (target // align) * align
    while t >= align:
        if dim % t == 0:
            return t
        t -= align
    return dim


def _apply_act(y, act):
    if act is None:
        return y
    if act == "gelu":
        return 0.5 * y * (1.0 + jnp.tanh(math.sqrt(2.0 / math.pi)
                                         * (y + 0.044715 * y * y * y)))
    if act == "relu":
        return jnp.maximum(y, 0.0)
    if act == "swish":
        return y * (1.0 / (1.0 + jnp.exp(-y)))
    raise ValueError(f"unknown activation {act}")


# ---------------------------------------------------------------------------
# Kernel 1: tiled position-wise linear  y = x @ W + b  (+ optional activation)
# grid = (M/tm, N/tn, K/tk), f32 accumulator scratch, K innermost / arbitrary.
# ---------------------------------------------------------------------------
def _linear_kernel(x_ref, w_ref, b_ref, o_ref, acc_ref, *, act):
    k = pl.program_id(2)

    @pl.when(k == 0)
    def _():
        acc_ref[...] = jnp.zeros_like(acc_ref)

    # operands fed to the MXU in their native dtype, accumulate in f32
    acc_ref[...] += jnp.dot(x_ref[...], w_ref[...],
                            preferred_element_type=jnp.float32)

    @pl.when(k == pl.num_programs(2) - 1)
    def _():
        y = acc_ref[...] + b_ref[...].astype(jnp.float32)
        y = _apply_act(y, act)
        o_ref[...] = y.astype(o_ref.dtype)


def pallas_linear(x2d, w, b, act=None, *, tm=256, tn=256, tk=512):
    M, K = x2d.shape
    N = w.shape[1]
    tm = _pick_tile(M, tm, 8)
    tn = _pick_tile(N, tn, 128)
    tk = _pick_tile(K, tk, 128)
    grid = (M // tm, N // tn, K // tk)

    itemsize = x2d.dtype.itemsize
    cost = pl.CostEstimate(
        flops=2 * M * N * K,
        transcendentals=(M * N if act in ("gelu", "swish") else 0),
        bytes_accessed=(M * K + K * N + M * N + N) * itemsize)

    return pl.pallas_call(
        partial(_linear_kernel, act=act),
        out_shape=jax.ShapeDtypeStruct((M, N), x2d.dtype),
        grid_spec=pltpu.PrefetchScalarGridSpec(
            num_scalar_prefetch=0,
            grid=grid,
            in_specs=[
                pl.BlockSpec((tm, tk), lambda i, j, k: (i, k)),
                pl.BlockSpec((tk, tn), lambda i, j, k: (k, j)),
                pl.BlockSpec((1, tn), lambda i, j, k: (0, j)),
            ],
            out_specs=pl.BlockSpec((tm, tn), lambda i, j, k: (i, j)),
            scratch_shapes=[pltpu.VMEM((tm, tn), jnp.float32)]),
        compiler_params=pltpu.CompilerParams(
            dimension_semantics=("parallel", "parallel", "arbitrary"),
            vmem_limit_bytes=VMEM_LIMIT),
        cost_estimate=cost,
    )(x2d, w, b.reshape(1, N))


# ---------------------------------------------------------------------------
# Kernel 2: fused  (x @ W + b + residual)  ->  LayerNorm  ->  length mask
# grid = (M/tm, K/tk), full output width D (lane-dense), f32 accumulator.
# Replaces the separate proj-matmul and add+SeqLayerNorm kernels.
# ---------------------------------------------------------------------------
def _linear_add_ln_kernel(x_ref, w_ref, b_ref, res_ref, g_ref, beta_ref,
                          vmask_ref, o_ref, acc_ref, *, eps):
    k = pl.program_id(1)

    @pl.when(k == 0)
    def _():
        acc_ref[...] = jnp.zeros_like(acc_ref)

    acc_ref[...] += jnp.dot(x_ref[...], w_ref[...],
                            preferred_element_type=jnp.float32)

    @pl.when(k == pl.num_programs(1) - 1)
    def _():
        z = (acc_ref[...] + b_ref[...].astype(jnp.float32)
             + res_ref[...].astype(jnp.float32))
        mean = jnp.mean(z, axis=-1, keepdims=True)
        var = jnp.mean(jnp.square(z - mean), axis=-1, keepdims=True)
        y = (z - mean) * jax.lax.rsqrt(var + eps)
        y = y * g_ref[...].astype(jnp.float32) + beta_ref[...].astype(jnp.float32)
        y = y * vmask_ref[...].astype(jnp.float32)     # zero padded rows
        o_ref[...] = y.astype(o_ref.dtype)


def pallas_linear_add_ln(x2d, w, b, res2d, gamma, beta, valid_mask,
                         eps=1e-5, *, tm=256, tk=512):
    M, K = x2d.shape
    N = w.shape[1]
    tm = _pick_tile(M, tm, 8)
    tk = _pick_tile(K, tk, 128)
    grid = (M // tm, K // tk)

    itemsize = x2d.dtype.itemsize
    cost = pl.CostEstimate(
        flops=2 * M * N * K + 10 * M * N,
        transcendentals=M,                      # rsqrt per row
        bytes_accessed=(M * K + K * N + 3 * M * N + 3 * N + M) * itemsize)

    return pl.pallas_call(
        partial(_linear_add_ln_kernel, eps=eps),
        out_shape=jax.ShapeDtypeStruct((M, N), x2d.dtype),
        grid_spec=pltpu.PrefetchScalarGridSpec(
            num_scalar_prefetch=0,
            grid=grid,
            in_specs=[
                pl.BlockSpec((tm, tk), lambda i, k: (i, k)),
                pl.BlockSpec((tk, N), lambda i, k: (k, 0)),
                pl.BlockSpec((1, N), lambda i, k: (0, 0)),
                pl.BlockSpec((tm, N), lambda i, k: (i, 0)),   # residual
                pl.BlockSpec((1, N), lambda i, k: (0, 0)),    # gamma
                pl.BlockSpec((1, N), lambda i, k: (0, 0)),    # beta
                pl.BlockSpec((tm, 1), lambda i, k: (i, 0)),   # valid-row mask
            ],
            out_specs=pl.BlockSpec((tm, N), lambda i, k: (i, 0)),
            scratch_shapes=[pltpu.VMEM((tm, N), jnp.float32)]),
        compiler_params=pltpu.CompilerParams(
            dimension_semantics=("parallel", "arbitrary"),
            vmem_limit_bytes=VMEM_LIMIT),
        cost_estimate=cost,
    )(x2d, w, b.reshape(1, N), res2d,
      gamma.reshape(1, N), beta.reshape(1, N), valid_mask)


# ---------------------------------------------------------------------------
# Kernel 3: flash-style masked multi-head attention
# grid = (B, H, q_tiles, kv_tiles); online softmax with m/l/acc VMEM scratch.
# ---------------------------------------------------------------------------
def _flash_attn_kernel(len_ref, q_ref, k_ref, v_ref, o_ref,
                       m_ref, l_ref, acc_ref, *, scale, d_head, bq, bk):
    b = pl.program_id(0)
    qi = pl.program_id(2)
    ki = pl.program_id(3)
    seq_len = len_ref[b]

    @pl.when(ki == 0)
    def _():
        m_ref[...] = jnp.full(m_ref.shape, -1e30, jnp.float32)
        l_ref[...] = jnp.zeros_like(l_ref)
        acc_ref[...] = jnp.zeros_like(acc_ref)

    q = q_ref[...]                                     # (bq, Dh), native dtype
    if scale:
        q = q * (1.0 / math.sqrt(d_head))              # fold scale into q
    k = k_ref[...]                                     # (bk, Dh)
    v = v_ref[...]

    s = jax.lax.dot_general(q, k, (((1,), (1,)), ((), ())),
                            preferred_element_type=jnp.float32)   # (bq, bk)

    row = qi * bq + jax.lax.broadcasted_iota(jnp.int32, (bq, bk), 0)
    col = ki * bk + jax.lax.broadcasted_iota(jnp.int32, (bq, bk), 1)
    s = jnp.where((row < seq_len) & (col < seq_len), s, -1e9)

    m_prev = m_ref[...]
    m_new = jnp.maximum(m_prev, jnp.max(s, axis=-1, keepdims=True))
    alpha = jnp.exp(m_prev - m_new)
    p = jnp.exp(s - m_new)                                          # (bq, bk)
    l_ref[...] = alpha * l_ref[...] + jnp.sum(p, axis=-1, keepdims=True)
    acc_ref[...] = alpha * acc_ref[...] + jax.lax.dot_general(
        p.astype(v.dtype), v, (((1,), (0,)), ((), ())),
        preferred_element_type=jnp.float32)
    m_ref[...] = m_new

    @pl.when(ki == pl.num_programs(3) - 1)
    def _():
        row_valid = (qi * bq
                     + jax.lax.broadcasted_iota(jnp.int32, (bq, 1), 0)) < seq_len
        out = acc_ref[...] * pl.reciprocal(l_ref[...], approx=True)
        out = jnp.where(row_valid, out, 0.0)      # padded query rows -> exactly 0
        o_ref[...] = out.astype(o_ref.dtype)


def pallas_flash_attention(q, k, v, lengths_arr, *, scale, tq=256, tkv=512):
    B, H, T, Dh = q.shape
    bq = _pick_tile(T, tq, 8)
    bk = _pick_tile(T, tkv, 8)
    grid = (B, H, T // bq, T // bk)

    q_spec = pl.BlockSpec((None, None, bq, Dh), lambda b, h, qi, ki, lens: (b, h, qi, 0))
    kv_spec = pl.BlockSpec((None, None, bk, Dh), lambda b, h, qi, ki, lens: (b, h, ki, 0))

    itemsize = q.dtype.itemsize
    cost = pl.CostEstimate(
        flops=4 * B * H * T * T * Dh,
        transcendentals=B * H * T * T,
        bytes_accessed=4 * B * H * T * Dh * itemsize)

    return pl.pallas_call(
        partial(_flash_attn_kernel, scale=scale, d_head=Dh, bq=bq, bk=bk),
        out_shape=jax.ShapeDtypeStruct((B, H, T, Dh), q.dtype),
        grid_spec=pltpu.PrefetchScalarGridSpec(
            num_scalar_prefetch=1,
            grid=grid,
            in_specs=[q_spec, kv_spec, kv_spec],
            out_specs=q_spec,
            scratch_shapes=[pltpu.VMEM((bq, 1), jnp.float32),
                            pltpu.VMEM((bq, 1), jnp.float32),
                            pltpu.VMEM((bq, Dh), jnp.float32)]),
        compiler_params=pltpu.CompilerParams(
            dimension_semantics=("parallel", "parallel", "parallel", "arbitrary"),
            vmem_limit_bytes=VMEM_LIMIT),
        cost_estimate=cost,
    )(lengths_arr, q, k, v)


# ---------------------------------------------------------------------------
# Block / encoder wrappers
# ---------------------------------------------------------------------------
def transformer_block(seq, lengths_arr, valid_mask, p, *, n_head, scale, activation):
    B, T, D = seq.shape
    Dh = D // n_head
    x2d = seq.reshape(B * T, D)

    # qkv projection (tiled matmul), then ONE fused transpose to (3,B,H,T,Dh)
    qkv = pallas_linear(x2d, p["attn_qkv_w"], p["attn_qkv_b"])          # (B*T, 3D)
    qkv = qkv.reshape(B, T, 3, n_head, Dh).transpose(2, 0, 3, 1, 4)     # (3,B,H,T,Dh)
    q, k, v = qkv[0], qkv[1], qkv[2]

    a = pallas_flash_attention(q, k, v, lengths_arr, scale=scale)       # (B,H,T,Dh)
    a2d = a.transpose(0, 2, 1, 3).reshape(B * T, D)                     # merge heads

    # merge-head projection + residual + ln_1 + length mask, fused
    n2d = pallas_linear_add_ln(a2d, p["attn_proj_w"], p["attn_proj_b"],
                               x2d, p["ln1_g"], p["ln1_b"], valid_mask)

    # MLP: fc (+gelu) tiled matmul, then proj + residual + ln_2 fused
    h2d = pallas_linear(n2d, p["fc_w"], p["fc_b"], act=activation)
    out2d = pallas_linear_add_ln(h2d, p["proj_w"], p["proj_b"],
                                 n2d, p["ln2_g"], p["ln2_b"], valid_mask)
    return out2d.reshape(B, T, D)


def transformer_encoder(seq, lengths, params, *, n_block, n_head, scale, activation):
    # SeqLayerNorm's unpack pads only up to max(lengths): trimming up-front is
    # equivalent (rows past every length never influence valid outputs).
    max_l = int(max(lengths))
    seq = seq[:, :max_l, :]
    B, T, D = seq.shape
    lengths_arr = jnp.asarray(lengths, dtype=jnp.int32)
    valid_mask = (jnp.arange(T, dtype=jnp.int32)[None, :]
                  < lengths_arr[:, None]).astype(seq.dtype).reshape(B * T, 1)
    for _ in range(n_block):
        # copy.deepcopy in the reference => identical initial params per block
        seq = transformer_block(seq, lengths_arr, valid_mask, params,
                                n_head=n_head, scale=scale, activation=activation)
    return seq


# ---------------------------------------------------------------------------
# Deterministic parameter init (shapes follow the module __init__)
# ---------------------------------------------------------------------------
def _xavier_uniform(key, d_in, d_out):
    bound = math.sqrt(6.0 / (d_in + d_out))
    return jax.random.uniform(key, (d_in, d_out), jnp.float32, -bound, bound)


def init_block_params(key, d_in):
    ks = jax.random.split(key, 8)
    return {
        "attn_qkv_w": _xavier_uniform(ks[0], d_in, 3 * d_in),
        "attn_qkv_b": jax.random.uniform(ks[1], (3 * d_in,), jnp.float32, -0.01, 0.01),
        "attn_proj_w": _xavier_uniform(ks[2], d_in, d_in),
        "attn_proj_b": jax.random.uniform(ks[3], (d_in,), jnp.float32, -0.01, 0.01),
        "ln1_g": jnp.ones((d_in,), jnp.float32),
        "ln1_b": jnp.zeros((d_in,), jnp.float32),
        "fc_w": _xavier_uniform(ks[4], d_in, 4 * d_in),
        "fc_b": jax.random.uniform(ks[5], (4 * d_in,), jnp.float32, -0.01, 0.01),
        "proj_w": _xavier_uniform(ks[6], 4 * d_in, d_in),
        "proj_b": jax.random.uniform(ks[7], (d_in,), jnp.float32, -0.01, 0.01),
        "ln2_g": jnp.ones((d_in,), jnp.float32),
        "ln2_b": jnp.zeros((d_in,), jnp.float32),
    }


if __name__ == "__main__":
    B, T, D, H, n_block = 2, 8, 32, 4, 2
    lengths = (8, 5)                      # per-batch valid lengths

    key = jax.random.PRNGKey(0)
    k_x, k_p = jax.random.split(key)
    seq = jax.random.normal(k_x, (B, T, D), jnp.float32)
    params = init_block_params(k_p, D)

    out = transformer_encoder(seq, lengths, params,
                              n_block=n_block, n_head=H,
                              scale=True, activation="gelu")
    out = jax.block_until_ready(out)

    assert out.shape == (B, max(lengths), D)
    assert bool(jnp.all(jnp.isfinite(out)))
    # padded rows (t >= length) must be exactly zero after SeqLayerNorm
    assert bool(jnp.all(out[1, lengths[1]:, :] == 0.0))
    print("KERNEL_OK")
</pallas_src>

<mosaic_0001>
module attributes {stable_mosaic.version = 11 : i64} {
  func.func @_linear_kernel(%arg0: i32, %arg1: i32, %arg2: i32, %arg3: memref<16x32xf32, #tpu.memory_space<vmem>>, %arg4: memref<32x96xf32, #tpu.memory_space<vmem>>, %arg5: memref<1x96xf32, #tpu.memory_space<vmem>>, %arg6: memref<16x96xf32, #tpu.memory_space<vmem>>, %arg7: memref<16x96xf32, #tpu.memory_space<vmem>>) attributes {dimension_semantics = [#tpu.dimension_semantics<parallel>, #tpu.dimension_semantics<parallel>, #tpu.dimension_semantics<arbitrary>], iteration_bounds = array<i64: 1, 1, 1>, scalar_prefetch = 0 : i64, scratch_operands = 1 : i64, tpu.core_type = #tpu.core_type<tc>, window_params = [{transform_indices = @transform_0, window_bounds = array<i64: 16, 32>}, {transform_indices = @transform_1, window_bounds = array<i64: 32, 96>}, {transform_indices = @transform_2, window_bounds = array<i64: 1, 96>}, {transform_indices = @transform_3, window_bounds = array<i64: 16, 96>}]} {
    %c0_i32 = arith.constant 0 : i32
    %0 = arith.cmpi eq, %arg2, %c0_i32 : i32
    %1 = arith.extui %0 : i1 to i32
    %c0_i32_0 = arith.constant 0 : i32
    %2 = arith.cmpi ne, %1, %c0_i32_0 : i32
    scf.if %2 {
      %cst_10 = arith.constant 0.000000e+00 : f32
      %12 = vector.broadcast %cst_10 : f32 to vector<16x96xf32>
      %c0_11 = arith.constant 0 : index
      %c0_12 = arith.constant 0 : index
      %13 = vector.load %arg7[%c0_11, %c0_12] : memref<16x96xf32, #tpu.memory_space<vmem>>, vector<16x96xf32>
      tpu.vector_store %arg7[%c0_11, %c0_12], %12 {strides = array<i32>} : memref<16x96xf32, #tpu.memory_space<vmem>>, vector<16x96xf32>,
    } else {
    }
    %c0 = arith.constant 0 : index
    %c0_1 = arith.constant 0 : index
    %3 = vector.load %arg7[%c0, %c0_1] : memref<16x96xf32, #tpu.memory_space<vmem>>, vector<16x96xf32>
    %c0_2 = arith.constant 0 : index
    %c0_3 = arith.constant 0 : index
    %4 = vector.load %arg3[%c0_2, %c0_3] : memref<16x32xf32, #tpu.memory_space<vmem>>, vector<16x32xf32>
    %c0_4 = arith.constant 0 : index
    %c0_5 = arith.constant 0 : index
    %5 = vector.load %arg4[%c0_4, %c0_5] : memref<32x96xf32, #tpu.memory_space<vmem>>, vector<32x96xf32>
    %cst = arith.constant dense<0.000000e+00> : vector<16x96xf32>
    %6 = tpu.matmul %4, %5, %cst {dimension_numbers = #tpu.dot_dimension_numbers<[1], [0], [0], [1], [0, 0, 1, 1], [], []>} : vector<16x32xf32>, vector<32x96xf32>, vector<16x96xf32> -> vector<16x96xf32>
    %7 = arith.addf %3, %6 : vector<16x96xf32>
    %c0_6 = arith.constant 0 : index
    %c0_7 = arith.constant 0 : index
    %8 = vector.load %arg7[%c0_6, %c0_7] : memref<16x96xf32, #tpu.memory_space<vmem>>, vector<16x96xf32>
    tpu.vector_store %arg7[%c0_6, %c0_7], %7 {strides = array<i32>} : memref<16x96xf32, #tpu.memory_space<vmem>>, vector<16x96xf32>,
    %c0_i32_8 = arith.constant 0 : i32
    %9 = arith.cmpi eq, %arg2, %c0_i32_8 : i32
    %10 = arith.extui %9 : i1 to i32
    %c0_i32_9 = arith.constant 0 : i32
    %11 = arith.cmpi ne, %10, %c0_i32_9 : i32
    scf.if %11 {
      %c0_10 = arith.constant 0 : index
      %c0_11 = arith.constant 0 : index
      %12 = vector.load %arg7[%c0_10, %c0_11] : memref<16x96xf32, #tpu.memory_space<vmem>>, vector<16x96xf32>
      %c0_12 = arith.constant 0 : index
      %c0_13 = arith.constant 0 : index
      %13 = vector.load %arg5[%c0_12, %c0_13] : memref<1x96xf32, #tpu.memory_space<vmem>>, vector<1x96xf32>
      %14 = vector.broadcast %13 : vector<1x96xf32> to vector<16x96xf32>
      %15 = arith.addf %12, %14 : vector<16x96xf32>
      %c0_14 = arith.constant 0 : index
      %c0_15 = arith.constant 0 : index
      %16 = vector.load %arg6[%c0_14, %c0_15] : memref<16x96xf32, #tpu.memory_space<vmem>>, vector<16x96xf32>
      tpu.vector_store %arg6[%c0_14, %c0_15], %15 {strides = array<i32>} : memref<16x96xf32, #tpu.memory_space<vmem>>, vector<16x96xf32>,
    } else {
    }
    return
  }
  func.func @transform_0(%arg0: i32, %arg1: i32, %arg2: i32) -> (i32, i32) {
    %c0_i32 = arith.constant 0 : i32
    return %arg0, %arg2 : i32, i32
  }
  func.func @transform_1(%arg0: i32, %arg1: i32, %arg2: i32) -> (i32, i32) {
    %c0_i32 = arith.constant 0 : i32
    return %arg2, %arg1 : i32, i32
  }
  func.func @transform_2(%arg0: i32, %arg1: i32, %arg2: i32) -> (i32, i32) {
    %c0_i32 = arith.constant 0 : i32
    %c0_i32_0 = arith.constant 0 : i32
    return %c0_i32, %arg1 : i32, i32
  }
  func.func @transform_3(%arg0: i32, %arg1: i32, %arg2: i32) -> (i32, i32) {
    %c0_i32 = arith.constant 0 : i32
    return %arg0, %arg1 : i32, i32
  }
}

</mosaic_0001>

<bundles_post_ra>
// kernel: tpu_custom_call.1
= control target key start
LH: loop header
LB: loop body
LE: loop exit
PB: predicated region body
PF: predicated region fallthrough
CT: control target
= control target key end

     0   :  { %8 = vsyncpa [#allocation4], 0  ;;  %s365_s0 = inlined_call_operand.hbm [shape: f32[16,32], index: 0, kind: input, shape index: {}]   ;;  %s366_s1 = inlined_call_operand.hbm [shape: f32[32,96], index: 1, kind: input, shape index: {}]   ;;  %s367_s2 = inlined_call_operand.vmem [shape: f32[1,96], index: 2, kind: input, shape index: {}]   ;;  %s368_s3 = inlined_call_operand.hbm [shape: f32[16,96], index: 3, kind: output, shape index: {}]  }
   0x1   :  { %9 = vsyncpa [#allocation7], 0 }
   0x2   :  { %10 = vsyncpa [#allocation5], 0  ;;  %s285_s12 = smov [#allocation3]   ;;  %s213_s16 = scalar_lea.hbm %s365_s0, 256 }
   0x3   :  { %s16_s13 = sshll.u32 %s285_s12, 4  ;;  %p214_p0 = scmp.ne.s32.totalorder %s365_s0, %s213_s16  ;;  %s17_s13 = int_to_ptr.vmem [resolvable:$true] %s16_s13 }
   0x4   :  { %p217_p1 = scmp.lt.u32.totalorder %s213_s16, %s365_s0 }
   0x6   :  { %p219_p2 = pnand %p217_p1, %p214_p0 }
   0x8   :  { %222 = shalt.err (!%p219_p2)
}
   0x9   :  { %s223_s21 = scalar_lea.vmem %s17_s13, 256  ;;  %p228_p4 = scmp.lt.s32.totalorder %s17_s13, %s17_s13 }
   0xa   :  { %p224_p3 = scmp.ne.s32.totalorder %s17_s13, %s223_s21  ;;  %p229_p5 = scmp.lt.s32.totalorder %s223_s21, %s223_s21 }
   0xc   :  { %p230_p6 = por %p229_p5, %p228_p4 }
   0xe   :  { %p231_p7 = pnand %p230_p6, %p224_p3 }
  0x10   :  { %234 = shalt.err (!%p231_p7)
}
  0x11   :  { %s286_s22 = smov 128   ;;  %s287_s23 = smov 8  }
  0x12   :  { %22 = dma.hbm_to_vmem [thread:$0]  %s365_s0, 256, %s17_s13, [#allocation4], %s286_s22, %s286_s22, %s287_s23  }
  0x13   :  { %s288_s26 = smov [#allocation6]   ;;  %s235_s30 = scalar_lea.hbm %s366_s1, 512 }
  0x14   :  { %s28_s27 = sshll.u32 %s288_s26, 4  ;;  %p236_p8 = scmp.ne.s32.totalorder %s366_s1, %s235_s30  ;;  %s29_s27 = int_to_ptr.vmem [resolvable:$true] %s28_s27 }
  0x15   :  { %p239_p9 = scmp.lt.u32.totalorder %s235_s30, %s366_s1 }
  0x17   :  { %p241_p10 = pnand %p239_p9, %p236_p8 }
  0x19   :  { %244 = shalt.err (!%p241_p10)
}
  0x1a   :  { %s245_s8 = scalar_lea.vmem %s29_s27, 512  ;;  %p250_p12 = scmp.lt.s32.totalorder %s29_s27, %s29_s27 }
  0x1b   :  { %p246_p11 = scmp.ne.s32.totalorder %s29_s27, %s245_s8  ;;  %p251_p13 = scmp.lt.s32.totalorder %s245_s8, %s245_s8 }
  0x1d   :  { %p252_p0 = por %p251_p13, %p250_p12 }
  0x1f   :  { %p253_p1 = pnand %p252_p0, %p246_p11 }
  0x21   :  { %256 = shalt.err (!%p253_p1)
}
  0x22   :  { %34 = dma.hbm_to_vmem [thread:$0]  %s366_s1, 512, %s29_s27, [#allocation7], %s286_s22, %s286_s22, %s287_s23  }
  0x23   :  { %279 = dma.done.wait [#allocation4], 256  }
  0x24   :  { %280 = vsyncadd [#allocation4], 4294967040 }
  0x25   :  { %281 = dma.done.wait [#allocation7], 512  }
  0x26   :  { %282 = vsyncadd [#allocation7], 4294966784  ;;  %vm47_vm0 = vcmask 785408   ;;  %v289_v0 = vmov 0.0   ;;  %vm58_vm1 = vcmask 261120   ;;  %v54_v1 = vld [vmem:[#allocation6] sm:$0xff] }
  0x27   :  { %49 = vst.msk [vmem:[#allocation2 + $0x8] sm:$0xff] %vm47_vm0, %v289_v0  ;;  %48 = vst.msk [vmem:[#allocation2] sm:$0xff] %vm47_vm0, %v289_v0  ;;  %v55_v2 = vld [vmem:[#allocation6 + $0x8] sm:$0xff]  ;;  %v56_v3 = vld [vmem:[#allocation6 + $0x10] sm:$0xff]  ;;  %s290_s11 = smov [#allocation8]  }
  0x28   :  { %v199_v4 = vpack.c.bf16 %v55_v2, %v54_v1  ;;  %v57_v5 = vld [vmem:[#allocation6 + $0x18] sm:$0xff]  ;;  %v52_v6 = vld [vmem:[#allocation3] sm:$0xff]  ;;  %v181_v15 = vld [vmem:[%s367_s2] ss:$0 sm:$0xff]  ;;  %s166_s12 = sshll.u32 %s290_s11, 4  ;;  %s167_s12 = int_to_ptr.vmem [resolvable:$true] %s166_s12 }
  0x29   :  { %v203_v7 = vpack.c.bf16 %v57_v5, %v56_v3  ;;  %196 = vmatprep.mubr.msk.f32.mxu0 %vm58_vm1, %v52_v6  ;;  %v53_v8 = vld [vmem:[#allocation3 + $0x8] sm:$0xff]  ;;  %s257_s13 = scalar_lea.vmem %s167_s12, 256  ;;  %p262_p3 = scmp.lt.s32.totalorder %s167_s12, %s167_s12 }
  0x2a   :  { %200 = vmatprep.subr.bf16.mxu0 %v199_v4  ;;  %p258_p2 = scmp.ne.s32.totalorder %s167_s12, %s257_s13  ;;  %p263_p4 = scmp.lt.s32.totalorder %s257_s13, %s257_s13 }
  0x2b   :  { %202 = vmatpush3.bf16.msra.mxu0 %v199_v4 }
  0x2c   :  { %204 = vmatprep.subr.bf16.mxu0 %v203_v7  ;;  %p264_p5 = por %p263_p4, %p262_p3 }
  0x2e   :  { %v51_v9 = vld [vmem:[#allocation2 + $0x8] sm:$0xff]  ;;  %v50_v10 = vld [vmem:[#allocation2] sm:$0xff]  ;;  %p265_p6 = pnand %p264_p5, %p258_p2 }
  0x2f   :  { %206 = vmatpush3.bf16.msra.mxu0 %v203_v7 }
  0x32   :  { %197 = vmatmul.mubr.msk.f32.vlgmr.msra.gmra.mrb[0].mxu0 %vm58_vm1, %v53_v8 }
 0x105   :  { %v198_v11 = vpop.f32.mrb[0].mxu0 }
 0x106   :  { %v141_v12 = vadd.f32 %v198_v11, %v51_v9  ;;  %v131_v13 = vpop.f32.mrb[1].mxu0 }
 0x107   :  { %v140_v14 = vadd.f32 %v131_v13, %v50_v10 }
 0x108   :  { %144 = vst.msk [vmem:[#allocation2 + $0x8] sm:$0xff] %vm47_vm0, %v141_v12 }
 0x109   :  { %143 = vst.msk [vmem:[#allocation2] sm:$0xff] %vm47_vm0, %v140_v14 }
 0x10f   :  { %v149_v16 = vld [vmem:[#allocation2 + $0x8] sm:$0xff] }
 0x110   :  { %v148_v17 = vld [vmem:[#allocation2] sm:$0xff]  ;;  %v158_v18 = vadd.f32 %v181_v15, %v149_v16 }
 0x111   :  { %v157_v19 = vadd.f32 %v181_v15, %v148_v17 }
 0x112   :  { %160 = vst.msk [vmem:[#allocation8 + $0x8] sm:$0xff] %vm47_vm0, %v158_v18 }
 0x113   :  { %159 = vst.msk [vmem:[#allocation8] sm:$0xff] %vm47_vm0, %v157_v19 }
 0x114   :  { %268 = shalt.err (!%p265_p6)
}
 0x115   :  { %s269_s15 = scalar_lea.hbm %s368_s3, 256 }
 0x116   :  { %p270_p7 = scmp.ne.s32.totalorder %s368_s3, %s269_s15  ;;  %p273_p8 = scmp.lt.u32.totalorder %s269_s15, %s368_s3 }
 0x118   :  { %p275_p9 = pnand %p273_p8, %p270_p7 }
 0x11a   :  { %278 = shalt.err (!%p275_p9)
}
 0x11b   :  { %172 = dma.vmem_to_hbm [thread:$0]  %s167_s12, 256, %s368_s3, [#allocation5], %s286_s22, %s286_s22, %s287_s23  }
 0x11c   :  { %283 = dma.done.wait [#allocation5], 256  }
 0x11d   :  { %284 = vsyncadd [#allocation5], 4294967040 }
 0x11e   :  { %176 = vsyncpa [#allocation4], 1 }
 0x11f   :  { %177 = vsyncpa [#allocation7], 1 }
 0x120   :  { %178 = vsyncpa [#allocation5], 1 }

</bundles_post_ra>
